<compile_context>
chip_gen: v6e
topology: v6e:2x2x1
jax: 0.10.0
libtpu: 0.0.40
codegen_flags: <defaults>
</compile_context>

<pallas_src>
import jax
import jax.numpy as jnp
from jax.experimental import pallas as pl
from jax.experimental.pallas import tpu as pltpu

DimAE = 20
dW = 2
K = 2 * dW + 1
shapeData = [1, 40, 1]          # (C, H, W) of the final view
_CPAD = 24                      # DimAE padded up to a multiple of 8 (sublane alignment)


# ----------------------------------------------------------------------------
# Pallas kernel: one lane-dense slab of B_TILE batch elements per grid step
# ----------------------------------------------------------------------------
def _encoder_kernel(p_ref, w1_ref, w2223_ref, w3c_ref, w3b_ref, o_ref):
    patches = p_ref[...]                                                        # (K, Nt)

    # conv1: circular 1-D conv along H, batch folded into the lane axis.
    h1 = jnp.dot(w1_ref[...], patches, preferred_element_type=jnp.float32)      # (20, Nt)

    # conv22 / conv23 fused into one sublane-aligned MXU dot; halves at rows
    # [0:24) and [24:48) so the slices below are vreg-aligned.
    h = jnp.dot(w2223_ref[...], h1, preferred_element_type=jnp.float32)         # (48, Nt)
    prod = h[:_CPAD, :] * h[_CPAD:, :]                                          # (24, Nt)

    # conv3: left half folded through conv21 & conv1 into w3c (1, K) applied to
    # the patch slab; right half applied to conv22*conv23 (zero-padded chans).
    y = (jnp.dot(w3c_ref[...], patches, preferred_element_type=jnp.float32)
         + jnp.dot(w3b_ref[...], prod, preferred_element_type=jnp.float32))     # (1, Nt)

    o_ref[...] = y


# ----------------------------------------------------------------------------
# Wrapper: weight folding + lane-dense layout prep (glue), then pallas_call
# ----------------------------------------------------------------------------
def _round_up(a, m):
    return (a + m - 1) // m * m


@jax.jit
def encoder_forward(x, w1, w21, w22, w23, w3):
    """x: (B, 1, H=40, 1) NCHW float32.  Returns (B, 1, 40, 1)."""
    B, C, H, W = x.shape
    assert C == 1 and W == 1 and H == shapeData[1]
    # NOTE: the reduction of the 5x5 conv1 to its center W-column is only
    # valid because W == 1 and padding == dW (guarded by the assert above).

    # ---- fold / repack weights (trace-time glue; tiny) ----------------------
    w1e = w1[:, 0, :, dW].astype(jnp.float32)            # (20, K)  center W-column
    w21m = w21[:, :, 0, 0].astype(jnp.float32)           # (20, 20)
    w22m = w22[:, :, 0, 0].astype(jnp.float32)
    w23m = w23[:, :, 0, 0].astype(jnp.float32)
    w3m = w3[:, :, 0, 0].astype(jnp.float32)             # (1, 40)

    # conv3-left o conv21 o conv1  ->  single (1, K) weight on the patch slab.
    w3c = (w3m[:, :DimAE] @ w21m) @ w1e                  # (1, K)
    # conv3-right, zero-padded to the aligned channel count.
    w3b = jnp.zeros((1, _CPAD), jnp.float32).at[:, :DimAE].set(w3m[:, DimAE:])
    # conv22 / conv23 stacked, each half padded to _CPAD rows for alignment.
    w2223 = jnp.zeros((2 * _CPAD, DimAE), jnp.float32)
    w2223 = w2223.at[:DimAE, :].set(w22m).at[_CPAD:_CPAD + DimAE, :].set(w23m)

    # ---- batch tiling: lane axis = B_TILE*H, a multiple of 128 --------------
    B_TILE = min(256, _round_up(B, 16))                  # 16*40 = 640 = 5*128
    B_pad = _round_up(B, B_TILE)
    N = B_pad * H
    N_TILE = B_TILE * H

    x2 = x.reshape(B, H).astype(jnp.float32)
    if B_pad != B:
        x2 = jnp.pad(x2, ((0, B_pad - B), (0, 0)))       # zero rows -> zero outputs, dropped

    # circular pad + im2col in the wrapper: patches[k, b*H + h] = x_pad[b, h + k]
    xp = jnp.concatenate([x2[:, H - dW:], x2, x2[:, :dW]], axis=-1)     # (B_pad, H+2dW)
    patches = jnp.stack([xp[:, k:k + H] for k in range(K)], axis=0)     # (K, B_pad, H)
    patches = patches.reshape(K, N)

    grid = (B_pad // B_TILE,)
    out = pl.pallas_call(
        _encoder_kernel,
        grid=grid,
        in_specs=[
            pl.BlockSpec((K, N_TILE), lambda g: (0, g)),
            pl.BlockSpec((DimAE, K), lambda g: (0, 0)),
            pl.BlockSpec((2 * _CPAD, DimAE), lambda g: (0, 0)),
            pl.BlockSpec((1, K), lambda g: (0, 0)),
            pl.BlockSpec((1, _CPAD), lambda g: (0, 0)),
        ],
        out_specs=pl.BlockSpec((1, N_TILE), lambda g: (0, g)),
        out_shape=jax.ShapeDtypeStruct((1, N), jnp.float32),
        compiler_params=pltpu.CompilerParams(dimension_semantics=("parallel",)),
    )(patches, w1e, w2223, w3c, w3b)

    # x.view(-1, shapeData[0], shapeData[1], shapeData[2])
    out = out.reshape(B_pad, H)[:B]
    return out.reshape(-1, shapeData[0], shapeData[1], shapeData[2])


# ----------------------------------------------------------------------------
# Pure-JAX reference (faithful port of the torch forward) for validation
# ----------------------------------------------------------------------------
def _ref_forward(x, w1, w21, w22, w23, w3):
    dn = ("NCHW", "OIHW", "NCHW")
    H = x.shape[2]
    x1 = jnp.concatenate([x[:, :, H - dW:, :], x, x[:, :, :dW, :]], axis=2)
    y = jax.lax.conv_general_dilated(x1, w1, (1, 1), ((dW, dW), (dW, dW)),
                                     dimension_numbers=dn)
    y = y[:, :, dW:H + dW, :]
    c1x1 = lambda z, w: jax.lax.conv_general_dilated(z, w, (1, 1), "VALID",
                                                     dimension_numbers=dn)
    y = jnp.concatenate([c1x1(y, w21), c1x1(y, w22) * c1x1(y, w23)], axis=1)
    y = c1x1(y, w3)
    return y.reshape(-1, shapeData[0], shapeData[1], shapeData[2])


# ----------------------------------------------------------------------------
# Deterministic parameter init (mirrors the __init__ shapes; no checkpoints)
# ----------------------------------------------------------------------------
def _init_params(key):
    k1, k21, k22, k23, k3 = jax.random.split(key, 5)

    def uinit(k, shape, fan_in):
        b = 1.0 / (fan_in ** 0.5)
        return jax.random.uniform(k, shape, jnp.float32, -b, b)

    w1 = uinit(k1, (DimAE, 1, K, K), 1 * K * K)
    # NN_4DVar.ConstrainedConv2d: zero the central tap of the kernel at init.
    # TODO(synk): ConstrainedConv2d may re-zero the center tap on every forward
    # (weight constraint); with raw checkpoint weights apply that zeroing to w1
    # before calling encoder_forward.
    w1 = w1.at[:, :, K // 2, K // 2].set(0.0)
    w21 = uinit(k21, (DimAE, DimAE, 1, 1), DimAE)
    w22 = uinit(k22, (DimAE, DimAE, 1, 1), DimAE)
    w23 = uinit(k23, (DimAE, DimAE, 1, 1), DimAE)
    w3 = uinit(k3, (1, 2 * DimAE, 1, 1), 2 * DimAE)
    return w1, w21, w22, w23, w3


if __name__ == "__main__":
    key = jax.random.PRNGKey(0)
    kx1, kx2, kp = jax.random.split(key, 3)

    w1, w21, w22, w23, w3 = _init_params(kp)
    H = shapeData[1]

    # Small canonical shape (batch=2) + a larger batch that exercises padding
    # and a multi-step (parallel) grid.
    for kx, B in ((kx1, 2), (kx2, 600)):
        x = jax.random.normal(kx, (B, 1, H, 1), dtype=jnp.float32)

        out = jax.block_until_ready(encoder_forward(x, w1, w21, w22, w23, w3))
        ref = jax.block_until_ready(_ref_forward(x, w1, w21, w22, w23, w3))

        assert out.shape == (B, shapeData[0], shapeData[1], shapeData[2]), out.shape
        assert jnp.allclose(out, ref, rtol=1e-2, atol=1e-3), \
            f"B={B}: mismatch, max abs err {jnp.max(jnp.abs(out - ref))}"

    print("KERNEL_OK")
</pallas_src>

<mosaic_0001>
module attributes {stable_mosaic.version = 11 : i64} {
  func.func @_encoder_kernel(%arg0: i32, %arg1: memref<5x640xf32, #tpu.memory_space<vmem>>, %arg2: memref<20x5xf32, #tpu.memory_space<vmem>>, %arg3: memref<48x20xf32, #tpu.memory_space<vmem>>, %arg4: memref<1x5xf32, #tpu.memory_space<vmem>>, %arg5: memref<1x24xf32, #tpu.memory_space<vmem>>, %arg6: memref<1x640xf32, #tpu.memory_space<vmem>>) attributes {dimension_semantics = [#tpu.dimension_semantics<parallel>], iteration_bounds = array<i64: 1>, scalar_prefetch = 0 : i64, scratch_operands = 0 : i64, tpu.core_type = #tpu.core_type<tc>, window_params = [{transform_indices = @transform_0, window_bounds = array<i64: 5, 640>}, {pipeline_mode = #tpu.pipeline_mode<synchronous>, transform_indices = @transform_1, window_bounds = array<i64: 20, 5>}, {pipeline_mode = #tpu.pipeline_mode<synchronous>, transform_indices = @transform_2, window_bounds = array<i64: 48, 20>}, {pipeline_mode = #tpu.pipeline_mode<synchronous>, transform_indices = @transform_3, window_bounds = array<i64: 1, 5>}, {pipeline_mode = #tpu.pipeline_mode<synchronous>, transform_indices = @transform_4, window_bounds = array<i64: 1, 24>}, {transform_indices = @transform_5, window_bounds = array<i64: 1, 640>}]} {
    %c0 = arith.constant 0 : index
    %c0_0 = arith.constant 0 : index
    %0 = vector.load %arg1[%c0, %c0_0] : memref<5x640xf32, #tpu.memory_space<vmem>>, vector<5x640xf32>
    %c0_1 = arith.constant 0 : index
    %c0_2 = arith.constant 0 : index
    %1 = vector.load %arg2[%c0_1, %c0_2] : memref<20x5xf32, #tpu.memory_space<vmem>>, vector<20x5xf32>
    %cst = arith.constant dense<0.000000e+00> : vector<20x640xf32>
    %2 = tpu.matmul %1, %0, %cst {dimension_numbers = #tpu.dot_dimension_numbers<[1], [0], [0], [1], [0, 0, 1, 1], [], []>} : vector<20x5xf32>, vector<5x640xf32>, vector<20x640xf32> -> vector<20x640xf32>
    %c0_3 = arith.constant 0 : index
    %c0_4 = arith.constant 0 : index
    %3 = vector.load %arg3[%c0_3, %c0_4] : memref<48x20xf32, #tpu.memory_space<vmem>>, vector<48x20xf32>
    %cst_5 = arith.constant dense<0.000000e+00> : vector<48x640xf32>
    %4 = tpu.matmul %3, %2, %cst_5 {dimension_numbers = #tpu.dot_dimension_numbers<[1], [0], [0], [1], [0, 0, 1, 1], [], []>} : vector<48x20xf32>, vector<20x640xf32>, vector<48x640xf32> -> vector<48x640xf32>
    %5 = vector.extract_strided_slice %4 {offsets = [0, 0], sizes = [24, 640], strides = [1, 1]} : vector<48x640xf32> to vector<24x640xf32>
    %6 = vector.extract_strided_slice %4 {offsets = [24, 0], sizes = [24, 640], strides = [1, 1]} : vector<48x640xf32> to vector<24x640xf32>
    %7 = arith.mulf %5, %6 : vector<24x640xf32>
    %c0_6 = arith.constant 0 : index
    %c0_7 = arith.constant 0 : index
    %8 = vector.load %arg4[%c0_6, %c0_7] : memref<1x5xf32, #tpu.memory_space<vmem>>, vector<1x5xf32>
    %cst_8 = arith.constant dense<0.000000e+00> : vector<1x640xf32>
    %9 = tpu.matmul %8, %0, %cst_8 {dimension_numbers = #tpu.dot_dimension_numbers<[1], [0], [0], [1], [0, 0, 1, 1], [], []>} : vector<1x5xf32>, vector<5x640xf32>, vector<1x640xf32> -> vector<1x640xf32>
    %c0_9 = arith.constant 0 : index
    %c0_10 = arith.constant 0 : index
    %10 = vector.load %arg5[%c0_9, %c0_10] : memref<1x24xf32, #tpu.memory_space<vmem>>, vector<1x24xf32>
    %cst_11 = arith.constant dense<0.000000e+00> : vector<1x640xf32>
    %11 = tpu.matmul %10, %7, %cst_11 {dimension_numbers = #tpu.dot_dimension_numbers<[1], [0], [0], [1], [0, 0, 1, 1], [], []>} : vector<1x24xf32>, vector<24x640xf32>, vector<1x640xf32> -> vector<1x640xf32>
    %12 = arith.addf %9, %11 : vector<1x640xf32>
    %c0_12 = arith.constant 0 : index
    %c0_13 = arith.constant 0 : index
    %13 = vector.load %arg6[%c0_12, %c0_13] : memref<1x640xf32, #tpu.memory_space<vmem>>, vector<1x640xf32>
    tpu.vector_store %arg6[%c0_12, %c0_13], %12 {strides = array<i32>} : memref<1x640xf32, #tpu.memory_space<vmem>>, vector<1x640xf32>,
    return
  }
  func.func @transform_0(%arg0: i32) -> (i32, i32) {
    %c0_i32 = arith.constant 0 : i32
    %c0_i32_0 = arith.constant 0 : i32
    return %c0_i32, %arg0 : i32, i32
  }
  func.func @transform_1(%arg0: i32) -> (i32, i32) {
    %c0_i32 = arith.constant 0 : i32
    %c0_i32_0 = arith.constant 0 : i32
    %c0_i32_1 = arith.constant 0 : i32
    return %c0_i32, %c0_i32_0 : i32, i32
  }
  func.func @transform_2(%arg0: i32) -> (i32, i32) {
    %c0_i32 = arith.constant 0 : i32
    %c0_i32_0 = arith.constant 0 : i32
    %c0_i32_1 = arith.constant 0 : i32
    return %c0_i32, %c0_i32_0 : i32, i32
  }
  func.func @transform_3(%arg0: i32) -> (i32, i32) {
    %c0_i32 = arith.constant 0 : i32
    %c0_i32_0 = arith.constant 0 : i32
    %c0_i32_1 = arith.constant 0 : i32
    return %c0_i32, %c0_i32_0 : i32, i32
  }
  func.func @transform_4(%arg0: i32) -> (i32, i32) {
    %c0_i32 = arith.constant 0 : i32
    %c0_i32_0 = arith.constant 0 : i32
    %c0_i32_1 = arith.constant 0 : i32
    return %c0_i32, %c0_i32_0 : i32, i32
  }
  func.func @transform_5(%arg0: i32) -> (i32, i32) {
    %c0_i32 = arith.constant 0 : i32
    %c0_i32_0 = arith.constant 0 : i32
    return %c0_i32, %arg0 : i32, i32
  }
}

</mosaic_0001>

<bundles_post_ra>
// kernel: encoder_forward.1
= control target key start
LH: loop header
LB: loop body
LE: loop exit
PB: predicated region body
PF: predicated region fallthrough
CT: control target
= control target key end

     0   :  { %vm38_vm0 = vcmask 1044480   ;;  %vm28_vm1 = vcmask 39936   ;;  %v1250_v3 = vmov 0.0   ;;  %vm1251_vm2 = vmmov 0   ;;  %s1440_s0 = inlined_call_operand.vmem [shape: f32[5,640], index: 0, kind: input, shape index: {}]   ;;  %s1441_s1 = inlined_call_operand.vmem [shape: f32[20,5], index: 1, kind: input, shape index: {}]   ;;  %s1442_s2 = inlined_call_operand.vmem [shape: f32[48,20], index: 2, kind: input, shape index: {}]   ;;  %s1443_s4 = inlined_call_operand.vmem [shape: f32[1,24], index: 4, kind: input, shape index: {}]   ;;  %s1444_s3 = inlined_call_operand.vmem [shape: f32[1,5], index: 3, kind: input, shape index: {}]   ;;  %s1445_s5 = inlined_call_operand.vmem [shape: f32[1,640], index: 5, kind: output, shape index: {}]  }
   0x1   :  { %v1286_v0 = vld [vmem:[%s1440_s0 + $0x8] sm:$0x1f]  ;;  %v1291_v1 = vld [vmem:[%s1440_s0 + $0x18] sm:$0x1f]  ;;  %v1296_v2 = vld [vmem:[%s1440_s0] sm:$0x1f]  ;;  %118 = vmatprep.mubr.f32.mxu0 %v1250_v3  ;;  %201 = vmatprep.mubr.f32.mxu1 %v1250_v3 }
   0x2   :  { %1140 = vmatprep.subr.msk.mxu0 %vm38_vm0, %v1286_v0  ;;  %1145 = vmatprep.subr.msk.mxu1 %vm38_vm0, %v1291_v1  ;;  %v1307_v4 = vld [vmem:[%s1440_s0 + $0x10] sm:$0x1f]  ;;  %v25_v5 = vld [vmem:[%s1441_s1] sm:$0xff]  ;;  %v26_v7 = vld [vmem:[%s1441_s1 + $0x8] sm:$0xff]  ;;  %vm325_vm3 = vcmask 1043456   ;;  %vm306_vm4 = vcmask 162816  }
   0x3   :  { %1141 = vmatpush1.msk.msra.mxu0 %vm38_vm0, %v1296_v2  ;;  %1146 = vmatpush1.msk.msra.mxu1 %vm38_vm0, %v1307_v4  ;;  %v1321_v6 = vld [vmem:[%s1440_s0 + $0x20] sm:$0x1f]  ;;  %v27_v8 = vld [vmem:[%s1441_s1 + $0x10] sm:$0xf]  ;;  %v301_v26 = vld [vmem:[%s1442_s2 + $0x8] sm:$0xff]  ;;  %vm655_vm5 = vcmask 195584  }
   0x4   :  { %1142 = vmatmul.mubr.msk.f32.vlgmr.msra.gmra.mxu0 %vm28_vm1, %v25_v5  ;;  %1147 = vmatmul.mubr.msk.f32.vlgmr.msra.gmra.mxu1 %vm28_vm1, %v25_v5  ;;  %v300_v23 = vld [vmem:[%s1442_s2] sm:$0xff]  ;;  %v302_v28 = vld [vmem:[%s1442_s2 + $0x10] sm:$0xff]  ;;  %v303_v30 = vld [vmem:[%s1442_s2 + $0x18] sm:$0xff] }
   0x5   :  { %124 = vmatprep.mubr.f32.mxu0 %v1250_v3  ;;  %207 = vmatprep.mubr.f32.mxu1 %v1250_v3  ;;  %v304_v31 = vld [vmem:[%s1442_s2 + $0x20] sm:$0xff]  ;;  %v305_v32 = vld [vmem:[%s1442_s2 + $0x28] sm:$0xff] }
   0x6   :  { %1207 = vmatprep.subr.mxu0 %v1250_v3 }
   0x7   :  { %1208 = vmatpush3.msk.msra.mxu0 %vm38_vm0, %v1321_v6 }
   0x8   :  { %1143 = vmatmul.mubr.msk.f32.gmra.mxu0 %vm28_vm1, %v26_v7  ;;  %1148 = vmatmul.mubr.msk.f32.gmra.mxu1 %vm28_vm1, %v26_v7 }
   0x9   :  { %130 = vmatprep.mubr.f32.mxu0 %v1250_v3  ;;  %213 = vmatprep.mubr.f32.mxu1 %v1250_v3 }
   0xc   :  { %1144 = vmatmul.mubr.msk.f32.gmra.mxu0 %vm28_vm1, %v27_v8  ;;  %1149 = vmatmul.mubr.msk.f32.gmra.mxu1 %vm28_vm1, %v27_v8 }
   0xd   :  { %1209 = vmatprep.mubr.msk.f32.mxu0 %vm1251_vm2, %v1250_v3  ;;  %405 = vmatprep.mubr.f32.mxu1 %v1250_v3 }
  0x10   :  { %1210 = vmatmul.mubr.msk.f32.vlgmr.msra.gmra.mxu0 %vm28_vm1, %v25_v5 }
  0x11   :  { %1212 = vmatprep.mubr.msk.f32.mxu0 %vm1251_vm2, %v1250_v3 }
  0x14   :  { %1213 = vmatmul.mubr.msk.f32.gmra.mxu0 %vm28_vm1, %v26_v7 }
  0x15   :  { %1215 = vmatprep.mubr.msk.f32.mxu0 %vm1251_vm2, %v1250_v3 }
  0x18   :  { %1216 = vmatmul.mubr.msk.f32.gmra.mxu0 %vm28_vm1, %v27_v8 }
  0x19   :  { %506 = vmatprep.mubr.f32.mxu0 %v1250_v3 }
  0xc4   :  { %v120_v9 = vpop.f32.mrf.mxu0  ;;  %v203_v10 = vpop.f32.mrf.mxu1 }
  0xc6   :  { %v122_v11 = vpop.f32.mrf.mxu0  ;;  %v205_v12 = vpop.f32.mrf.mxu1 }
  0xc8   :  { %v126_v13 = vpop.f32.mrf.mxu0  ;;  %v209_v14 = vpop.f32.mrf.mxu1 }
  0xca   :  { %v128_v15 = vpop.f32.mrf.mxu0  ;;  %v211_v16 = vpop.f32.mrf.mxu1 }
  0xcc   :  { %v132_v17 = vpop.f32.mrf.mxu0  ;;  %v215_v18 = vpop.f32.mrf.mxu1 }
  0xce   :  { %v134_v19 = vpop.f32.mrf.mxu0  ;;  %v217_v20 = vpop.f32.mrf.mxu1 }
  0xcf   :  { %1154 = vmatprep.subr.msk.mxu1 %vm325_vm3, %v134_v19  ;;  %1162 = vmatprep.subr.msk.mxu0 %vm325_vm3, %v217_v20 }
  0xd0   :  { %v286_v21 = vpop.f32.mrf.mxu0  ;;  %1155 = vmatpush1.msk.msra.mxu1 %vm325_vm3, %v132_v17  ;;  %1163 = vmatpush1.msk.msra.mxu0 %vm325_vm3, %v215_v18 }
  0xd1   :  { %369 = vmatprep.subr.mxu1 %v128_v15  ;;  %470 = vmatprep.subr.mxu0 %v211_v16  ;;  %v653_v16 = vld [vmem:[%s1444_s3] sm:$0x1] }
  0xd2   :  { %v1211_v22 = vpop.f32.mrf.mxu0  ;;  %370 = vmatpush1.msra.mxu1 %v126_v13  ;;  %471 = vmatpush1.msra.mxu0 %v209_v14 }
  0xd3   :  { %371 = vmatprep.subr.mxu1 %v122_v11  ;;  %472 = vmatprep.subr.mxu0 %v205_v12  ;;  %v654_v12 = vld [vmem:[%s1443_s4] sm:$0x1] }
  0xd4   :  { %v291_v24 = vpop.f32.mrf.mxu0  ;;  %372 = vmatpush1.msra.mxu1 %v120_v9  ;;  %473 = vmatpush1.msra.mxu0 %v203_v10 }
  0xd5   :  { %1156 = vmatmul.mubr.msk.f32.vlgmr.msra.gmra.mxu1 %vm306_vm4, %v300_v23  ;;  %1164 = vmatmul.mubr.msk.f32.vlgmr.msra.gmra.mxu0 %vm306_vm4, %v300_v23 }
  0xd6   :  { %v1214_v25 = vpop.f32.mrf.mxu0  ;;  %411 = vmatprep.mubr.f32.mxu1 %v1250_v3  ;;  %512 = vmatprep.mubr.f32.mxu0 %v1250_v3 }
  0xd8   :  { %v296_v27 = vpop.f32.mrf.mxu0 }
  0xd9   :  { %1157 = vmatmul.mubr.msk.f32.gmra.mxu1 %vm306_vm4, %v301_v26  ;;  %1165 = vmatmul.mubr.msk.f32.gmra.mxu0 %vm306_vm4, %v301_v26 }
  0xda   :  { %1218 = vmatprep.subr.msk.mxu1 %vm325_vm3, %v296_v27  ;;  %417 = vmatprep.mubr.f32.mxu1 %v1250_v3  ;;  %v1217_v29 = vpop.f32.mrf.mxu0 }
  0xdb   :  { %1219 = vmatpush3.msk.msra.mxu1 %vm325_vm3, %v296_v27  ;;  %518 = vmatprep.mubr.f32.mxu0 %v1250_v3 }
  0xdc   :  { %1220 = vmatprep.subr.mxu1 %v291_v24 }
  0xdd   :  { %1221 = vmatpush3.msra.mxu1 %v291_v24  ;;  %1166 = vmatmul.mubr.msk.f32.gmra.mxu0 %vm306_vm4, %v302_v28 }
  0xde   :  { %1158 = vmatmul.mubr.msk.f32.gmra.mxu1 %vm306_vm4, %v302_v28  ;;  %1222 = vmatprep.subr.mxu1 %v286_v21 }
  0xdf   :  { %1223 = vmatpush3.msra.mxu1 %v286_v21  ;;  %423 = vmatprep.mubr.f32.mxu1 %v1250_v3  ;;  %v1252_v21 = vmov 1966171168  }
  0xe0   :  { %524 = vmatprep.mubr.f32.mxu0 %v1250_v3  ;;  %v1094_v22 = vunpack.c.l.s4 %v1252_v21 }
  0xe1   :  { %1167 = vmatmul.mubr.msk.f32.gmra.mxu0 %vm306_vm4, %v303_v30 }
  0xe2   :  { %1159 = vmatmul.mubr.msk.f32.gmra.mxu1 %vm306_vm4, %v303_v30  ;;  %530 = vmatprep.mubr.f32.mxu0 %v1250_v3 }
  0xe3   :  { %429 = vmatprep.mubr.f32.mxu1 %v1250_v3 }
  0xe5   :  { %1168 = vmatmul.mubr.msk.f32.gmra.mxu0 %vm306_vm4, %v304_v31 }
  0xe6   :  { %1160 = vmatmul.mubr.msk.f32.gmra.mxu1 %vm306_vm4, %v304_v31  ;;  %536 = vmatprep.mubr.f32.mxu0 %v1250_v3 }
  0xe7   :  { %435 = vmatprep.mubr.f32.mxu1 %v1250_v3 }
  0xe9   :  { %1169 = vmatmul.mubr.msk.f32.gmra.mxu0 %vm306_vm4, %v305_v32 }
  0xea   :  { %1161 = vmatmul.mubr.msk.f32.gmra.mxu1 %vm306_vm4, %v305_v32  ;;  %723 = vmatprep.mubr.f32.mxu0 %v1250_v3 }
  0xeb   :  { %1224 = vmatprep.mubr.msk.f32.mxu1 %vm306_vm4, %v300_v23  ;;  %v1096_v23 = vlaneseq }
  0xed   :  { %v1097_v29 = vshrl.u32 %v1096_v23, 7  ;;  %vm1133_vm6 = vcmp.lt.s32.totalorder %v1096_v23, 640 }
  0xee   :  { %1225 = vmatmul.mubr.msk.f32.vlgmr.msra.gmra.mxu1 %vm306_vm4, %v301_v26 }
  0xef   :  { %1227 = vmatprep.mubr.msk.f32.mxu1 %vm306_vm4, %v302_v28  ;;  %v1095_v28 = vunpack.c.0.s8 %v1094_v22 }
  0xf2   :  { %1228 = vmatmul.mubr.msk.f32.gmra.mxu1 %vm306_vm4, %v303_v30 }
  0xf3   :  { %1230 = vmatprep.mubr.msk.f32.mxu1 %vm306_vm4, %v304_v31 }
  0xf6   :  { %1231 = vmatmul.mubr.msk.f32.gmra.mxu1 %vm306_vm4, %v305_v32 }
  0xf7   :  { %794 = vmatprep.mubr.f32.mxu1 %v1250_v3 }
 0x195   :  { %v407_v33 = vpop.f32.mrf.mxu1  ;;  %v508_v34 = vpop.f32.mrf.mxu0 }
 0x197   :  { %v409_v35 = vpop.f32.mrf.mxu1  ;;  %v510_v36 = vpop.f32.mrf.mxu0 }
 0x199   :  { %v413_v37 = vpop.f32.mrf.mxu1  ;;  %v514_v38 = vpop.f32.mrf.mxu0 }
 0x19b   :  { %v415_v39 = vpop.f32.mrf.mxu1  ;;  %v516_v40 = vpop.f32.mrf.mxu0 }
 0x19d   :  { %v520_v41 = vpop.f32.mrf.mxu0 }
 0x19e   :  { %v419_v42 = vpop.f32.mrf.mxu1 }
 0x19f   :  { %v522_v43 = vpop.f32.mrf.mxu0 }
 0x1a0   :  { %v421_v44 = vpop.f32.mrf.mxu1 }
 0x1a1   :  { %v526_v45 = vpop.f32.mrf.mxu0 }
 0x1a2   :  { %v425_v46 = vpop.f32.mrf.mxu1  ;;  %v640_v10 = vmul.f32 %v526_v45, %v508_v34 }
 0x1a3   :  { %v528_v47 = vpop.f32.mrf.mxu0  ;;  %v638_v13 = vmul.f32 %v425_v46, %v407_v33 }
 0x1a4   :  { %v427_v48 = vpop.f32.mrf.mxu1  ;;  %v641_v7 = vmul.f32 %v528_v47, %v510_v36 }
 0x1a5   :  { %v532_v49 = vpop.f32.mrf.mxu0  ;;  %v639_v11 = vmul.f32 %v427_v48, %v409_v35 }
 0x1a6   :  { %v431_v50 = vpop.f32.mrf.mxu1  ;;  %v645_v63 = vmul.f32 %v532_v49, %v514_v38 }
 0x1a7   :  { %v534_v51 = vpop.f32.mrf.mxu0  ;;  %v643_v8 = vmul.f32 %v431_v50, %v413_v37 }
 0x1a8   :  { %v433_v52 = vpop.f32.mrf.mxu1  ;;  %v646_v60 = vmul.f32 %v534_v51, %v516_v40 }
 0x1a9   :  { %v538_v53 = vpop.f32.mrf.mxu0  ;;  %v644_v5 = vmul.f32 %v433_v52, %v415_v39 }
 0x1aa   :  { %v437_v54 = vpop.f32.mrf.mxu1  ;;  %v650_v58 = vmul.f32 %v538_v53, %v520_v41 }
 0x1ab   :  { %v540_v55 = vpop.f32.mrf.mxu0  ;;  %v648_v61 = vmul.f32 %v437_v54, %v419_v42 }
 0x1ac   :  { %v439_v56 = vpop.f32.mrf.mxu1  ;;  %v651_v57 = vmul.f32 %v540_v55, %v522_v43 }
 0x1ad   :  { %v649_v59 = vmul.f32 %v439_v56, %v421_v44 }
 0x1ae   :  { %756 = vmatprep.subr.mxu1 %v651_v57  ;;  %v1226_v62 = vpop.f32.mrf.mxu1 }
 0x1af   :  { %685 = vmatprep.subr.mxu0 %v649_v59  ;;  %757 = vmatpush1.msra.mxu1 %v650_v58 }
 0x1b0   :  { %686 = vmatpush1.msra.mxu0 %v648_v61  ;;  %758 = vmatprep.subr.mxu1 %v646_v60  ;;  %v609_v9 = vpop.f32.mrf.mxu1 }
 0x1b1   :  { %687 = vmatprep.subr.mxu0 %v644_v5  ;;  %759 = vmatpush1.msra.mxu1 %v645_v63 }
 0x1b2   :  { %688 = vmatpush1.msra.mxu0 %v643_v8  ;;  %760 = vmatprep.subr.mxu1 %v641_v7  ;;  %v1229_v14 = vpop.f32.mrf.mxu1 }
 0x1b3   :  { %689 = vmatprep.subr.mxu0 %v639_v11  ;;  %761 = vmatpush1.msra.mxu1 %v640_v10 }
 0x1b4   :  { %690 = vmatpush1.msra.mxu0 %v638_v13  ;;  %v619_v15 = vpop.f32.mrf.mxu1  ;;  %1178 = vmatmul.mubr.msk.f32.vlgmr.msra.gmra.mxu1 %vm655_vm5, %v654_v12 }
 0x1b5   :  { %1233 = vmatprep.subr.mxu0 %v1250_v3  ;;  %1177 = vmatmul.mubr.msk.f32.vlgmr.msra.gmra.mxu0 %vm655_vm5, %v654_v12 }
 0x1b6   :  { %v1232_v17 = vpop.f32.mrf.mxu1  ;;  %1180 = vmatprep.subr.msk.mxu1 %vm38_vm0, %v1286_v0  ;;  %938 = vmatprep.mubr.f32.mxu1 %v1250_v3  ;;  %v642_v0 = vmul.f32 %v1229_v14, %v609_v9 }
 0x1b7   :  { %v652_v18 = vmul.f32 %v1232_v17, %v619_v15  ;;  %1181 = vmatpush1.msk.msra.mxu1 %vm38_vm0, %v1296_v2  ;;  %1239 = vmatprep.mubr.msk.f32.mxu0 %vm1251_vm2, %v1250_v3 }
 0x1b8   :  { %v629_v19 = vpop.f32.mrf.mxu1  ;;  %1182 = vmatmul.mubr.msk.f32.vlgmr.msra.gmra.mxu1 %vm28_vm1, %v653_v16  ;;  %1183 = vmatprep.subr.msk.mxu1 %vm38_vm0, %v1291_v1 }
 0x1b9   :  { %v647_v20 = vmul.f32 %v1226_v62, %v629_v19  ;;  %1234 = vmatpush3.msra.mxu0 %v652_v18  ;;  %1184 = vmatpush1.msk.msra.mxu1 %vm38_vm0, %v1307_v4 }
 0x1ba   :  { %1235 = vmatprep.subr.mxu0 %v1250_v3  ;;  %1009 = vmatprep.mubr.f32.mxu1 %v1250_v3 }
 0x1bb   :  { %1236 = vmatpush3.msra.mxu0 %v647_v20 }
 0x1bc   :  { %1237 = vmatprep.subr.mxu0 %v1250_v3  ;;  %1185 = vmatmul.mubr.msk.f32.vlgmr.msra.gmra.mxu1 %vm28_vm1, %v653_v16 }
 0x1bd   :  { %1238 = vmatpush3.msra.mxu0 %v642_v0 }
 0x1be   :  { %1240 = vmatmul.mubr.msk.f32.vlgmr.msra.gmra.mxu0 %vm655_vm5, %v654_v12  ;;  %1242 = vmatprep.subr.mxu0 %v1250_v3 }
 0x1bf   :  { %1243 = vmatpush3.msk.msra.mxu0 %vm38_vm0, %v1321_v6  ;;  %1244 = vmatprep.mubr.msk.f32.mxu0 %vm1251_vm2, %v1250_v3  ;;  %v1098_v3 = vsub.s32 %v1095_v28, %v1097_v29 }
 0x1c2   :  { %1245 = vmatmul.mubr.msk.f32.vlgmr.msra.gmra.mxu0 %vm28_vm1, %v653_v16 }
 0x274   :  { %v796_v1 = vpop.f32.mrf.mxu1 }
 0x275   :  { %v725_v2 = vpop.f32.mrf.mxu0 }
 0x276   :  { %v798_v4 = vpop.f32.mrf.mxu1 }
 0x277   :  { %v727_v25 = vpop.f32.mrf.mxu0 }
 0x278   :  { %v940_v24 = vpop.f32.mrf.mxu1 }
 0x279   :  { %v941_v31 = vadd.f32 %v940_v24, %v725_v2 }
 0x27a   :  { %v942_v26 = vpop.f32.mrf.mxu1 }
 0x27b   :  { %v943_v27 = vadd.f32 %v942_v26, %v727_v25 }
 0x27c   :  { %v1011_v30 = vpop.f32.mrf.mxu1 }
 0x27d   :  { %v1091_v33 = vcombine.low %v941_v31, %v943_v27  ;;  %v1012_v34 = vadd.f32 %v1011_v30, %v796_v1 }
 0x27e   :  { %v867_v6 = vpop.f32.mrf.mxu0  ;;  %v1013_v32 = vpop.f32.mrf.mxu1 }
 0x27f   :  { %v1014_v35 = vadd.f32 %v1013_v32, %v798_v4  ;;  %v1099_v39 = vrot.slane %v1091_v33, %v1098_v3 }
 0x280   :  { %v1241_v36 = vpop.f32.mrf.mxu0 }
 0x281   :  { %v1092_v37 = vcombine.low %v1012_v34, %v1014_v35 }
 0x282   :  { %v1082_v38 = vpop.f32.mrf.mxu0 }
 0x283   :  { %v1106_v40 = vrot.slane %v1092_v37, %v1098_v3  ;;  %v1083_v41 = vadd.f32 %v1082_v38, %v867_v6 }
 0x284   :  { %v1246_v42 = vpop.f32.mrf.mxu0 }
 0x285   :  { %v1114_v43 = vcombine.low %v1099_v39, %v1106_v40  ;;  %v1113_v44 = vrot.slane %v1083_v41, %v1098_v3 }
 0x287   :  { %v1121_v45 = vrot.slane %v1114_v43, %v1098_v3  ;;  %v1128_v46 = vrot.slane %v1113_v44, %v1098_v3 }
 0x289   :  { %v1129_v47 = vcombine.low %v1121_v45, %v1128_v46 }
 0x28b   :  { %1135 = vst.msk [vmem:[%s1445_s5] sm:$0x1f] %vm1133_vm6, %v1129_v47 }

</bundles_post_ra>
